<compile_context>
chip_gen: v7x
topology: tpu7x:2x2x1
jax: 0.10.0
libtpu: 0.0.40
codegen_flags: <defaults>
</compile_context>

<pallas_src>
import jax
import jax.numpy as jnp
from jax.experimental import pallas as pl
from jax.experimental.pallas import tpu as pltpu

_LANE = 128       # vreg lane width: last dim should be a multiple of this
_SUBLANE = 8      # vreg sublane count: second-to-last dim multiple
_NEG_BIG = -1e30  # f32 pad for the class-axis bias -> padded columns softmax to 0


def _round_up(n, m):
    return ((n + m - 1) // m) * m


def _vmem_limit_bytes():
    """Generation-aware VMEM request: ~80% of physical capacity, with a safe fallback."""
    try:
        cap = pltpu.get_tpu_info().vmem_capacity_bytes
        if cap:
            return int(cap * 0.8)   # ~51 MiB on v7x (64 MiB), ~102 MiB on v5e/v6e (128 MiB)
    except Exception:
        pass
    return 64 * 1024 * 1024


def mlp_kernel(x_ref, w1_ref, b1_ref, w2_ref, b2_ref, o_ref):
    # ---- fc1 on the MXU: operands in the weight dtype (f32 or bf16), f32 accumulate ----
    x = x_ref[...].astype(w1_ref.dtype)
    h = jnp.dot(x, w1_ref[...], preferred_element_type=jnp.float32)
    # ---- bias + ReLU in f32 on the VPU ----
    h = jnp.maximum(h + b1_ref[...], 0.0)
    # ---- fc2 on the MXU ----
    logits = jnp.dot(h.astype(w2_ref.dtype), w2_ref[...],
                     preferred_element_type=jnp.float32)
    logits = logits + b2_ref[...]
    # ---- numerically stable softmax over the last (class) axis ----
    m = jnp.max(logits, axis=-1, keepdims=True)
    e = jnp.exp(logits - m)
    denom = jnp.sum(e, axis=-1, keepdims=True)
    # EUP approximate reciprocal + one Newton-Raphson step (~f32 accurate, near-free).
    inv = pl.reciprocal(denom, approx=True)
    inv = inv * (2.0 - denom * inv)
    o_ref[...] = (e * inv).astype(o_ref.dtype)


def mlp_forward(x, w1, b1, w2, b2, *, tile_m=256, mxu_dtype=None):
    """x: (B, D_in); w1: (D_in, H); b1: (H,); w2: (H, D_out); b2: (D_out,).

    mxu_dtype: optional dtype (e.g. jnp.bfloat16) for the matmul operands; accumulation
    and the bias/ReLU/softmax epilogue always stay in f32.
    """
    B, D_in = x.shape
    H = w1.shape[1]
    D_out = w2.shape[1]

    w_dtype = jnp.dtype(mxu_dtype) if mxu_dtype is not None else jnp.dtype(x.dtype)

    # Pad only the small weight/bias feature dims to 128-lane multiples; x is untouched.
    H_p = _round_up(H, _LANE)
    D_out_p = _round_up(D_out, _LANE)

    # Batch tile: multiple of the sublane count; tiny problems collapse to one grid step.
    tm = min(tile_m, _round_up(B, _SUBLANE))
    tm = _round_up(tm, _SUBLANE)
    grid = (pl.cdiv(B, tm),)

    # Weight/bias padding (done once; pads contribute exactly 0 through fc1/ReLU/fc2).
    w1_p = jnp.pad(w1, ((0, 0), (0, H_p - H))).astype(w_dtype)
    b1_p = jnp.pad(b1.astype(jnp.float32), (0, H_p - H)).reshape(1, H_p)
    w2_p = jnp.pad(w2, ((0, H_p - H), (0, D_out_p - D_out))).astype(w_dtype)
    # Class-axis bias padded with a huge negative (kept in f32!) so padded logits -> 0.
    b2_p = jnp.pad(b2.astype(jnp.float32), (0, D_out_p - D_out),
                   constant_values=_NEG_BIG).reshape(1, D_out_p)

    itemsize_x = jnp.dtype(x.dtype).itemsize
    itemsize_w = jnp.dtype(w_dtype).itemsize
    cost = pl.CostEstimate(
        flops=2 * B * (D_in * H_p + H_p * D_out_p),
        transcendentals=B * D_out_p,
        bytes_accessed=(x.size * itemsize_x
                        + (w1_p.size + w2_p.size) * itemsize_w
                        + (b1_p.size + b2_p.size) * 4
                        + B * D_out_p * itemsize_x),
    )

    # TODO(synk): for very large H / D_out where even single-buffered weights exceed
    # ~40-50 MiB (v7x's 64 MiB VMEM), add a second "arbitrary" grid axis tiling H with
    # an f32 logits accumulator in scratch and a softmax epilogue under pl.when(last).

    def build(single_buffer_weights):
        w_kwargs = (dict(pipeline_mode=pl.Buffered(1))
                    if single_buffer_weights else {})
        return pl.pallas_call(
            mlp_kernel,
            out_shape=jax.ShapeDtypeStruct((B, D_out_p), x.dtype),
            grid_spec=pltpu.PrefetchScalarGridSpec(
                num_scalar_prefetch=0,
                grid=grid,
                in_specs=[
                    # x: tiled over batch, pipelined/double-buffered, no padding.
                    pl.BlockSpec((tm, D_in), lambda i: (i, 0)),
                    # Weights / biases: constant index_map -> VMEM-resident; single buffer.
                    pl.BlockSpec((D_in, H_p), lambda i: (0, 0), **w_kwargs),
                    pl.BlockSpec((1, H_p), lambda i: (0, 0), **w_kwargs),
                    pl.BlockSpec((H_p, D_out_p), lambda i: (0, 0), **w_kwargs),
                    pl.BlockSpec((1, D_out_p), lambda i: (0, 0), **w_kwargs),
                ],
                out_specs=pl.BlockSpec((tm, D_out_p), lambda i: (i, 0)),
            ),
            compiler_params=pltpu.CompilerParams(
                # Row-wise softmax -> batch tiles independent: shard across TensorCores
                # on v7x; harmless on single-TC v5e/v6e.
                dimension_semantics=("parallel",),
                vmem_limit_bytes=_vmem_limit_bytes(),
            ),
            cost_estimate=cost,
        )

    args = (x, w1_p, b1_p, w2_p, b2_p)
    try:
        out_p = build(True)(*args)
    except Exception:
        # Fallback for JAX versions where single-buffered pipeline_mode is rejected.
        out_p = build(False)(*args)

    # Strip the output-feature padding (batch was never padded).
    return out_p[:, :D_out] if D_out_p != D_out else out_p


def mlp_reference(x, w1, b1, w2, b2):
    h = jnp.maximum(x @ w1 + b1, 0.0)
    logits = h @ w2 + b2
    return jax.nn.softmax(logits, axis=1)


if __name__ == "__main__":
    # Small shapes consistent with the module's forward: x is (batch, input_dim).
    batch, input_dim, hidden_dim, output_dim = 64, 32, 64, 16

    key = jax.random.PRNGKey(0)
    k_x, k_w1, k_b1, k_w2, k_b2 = jax.random.split(key, 5)

    x = jax.random.normal(k_x, (batch, input_dim), dtype=jnp.float32)

    # PyTorch Linear stores weight as (out, in); build that, then transpose to the
    # kernel's (in, out) layout.
    w1 = (jax.random.normal(k_w1, (hidden_dim, input_dim), jnp.float32) * 0.1).T
    b1 = jax.random.normal(k_b1, (hidden_dim,), jnp.float32) * 0.1
    w2 = (jax.random.normal(k_w2, (output_dim, hidden_dim), jnp.float32) * 0.1).T
    b2 = jax.random.normal(k_b2, (output_dim,), jnp.float32) * 0.1

    ref = mlp_reference(x, w1, b1, w2, b2)

    # Default path: tile_m=256 -> a single grid step for B=64 (no pipeline overhead).
    out = jax.block_until_ready(mlp_forward(x, w1, b1, w2, b2))
    assert out.shape == (batch, output_dim)
    assert jnp.allclose(out, ref, atol=1e-4, rtol=1e-4)
    assert jnp.allclose(jnp.sum(out, axis=1), 1.0, atol=1e-4)

    # Multi-tile, pipelined path (grid=(2,)) to exercise the batch tiling.
    out_tiled = jax.block_until_ready(mlp_forward(x, w1, b1, w2, b2, tile_m=32))
    assert jnp.allclose(out_tiled, ref, atol=1e-4, rtol=1e-4)

    # bf16 MXU-operand path (f32 accumulate + f32 epilogue); looser tolerance by design.
    out_bf16 = jax.block_until_ready(
        mlp_forward(x, w1, b1, w2, b2, mxu_dtype=jnp.bfloat16))
    assert jnp.allclose(out_bf16, ref, atol=3e-2, rtol=3e-2)

    print("KERNEL_OK")
</pallas_src>

<mosaic_0001>
module attributes {stable_mosaic.version = 11 : i64} {
  func.func @mlp_kernel(%arg0: i32, %arg1: memref<64x32xf32, #tpu.memory_space<vmem>>, %arg2: memref<32x128xf32, #tpu.memory_space<vmem>>, %arg3: memref<1x128xf32, #tpu.memory_space<vmem>>, %arg4: memref<128x128xf32, #tpu.memory_space<vmem>>, %arg5: memref<1x128xf32, #tpu.memory_space<vmem>>, %arg6: memref<64x128xf32, #tpu.memory_space<vmem>>) attributes {dimension_semantics = [#tpu.dimension_semantics<parallel>], iteration_bounds = array<i64: 1>, scalar_prefetch = 0 : i64, scratch_operands = 0 : i64, tpu.core_type = #tpu.core_type<tc>, window_params = [{transform_indices = @transform_0, window_bounds = array<i64: 64, 32>}, {pipeline_mode = #tpu.pipeline_mode<synchronous>, transform_indices = @transform_1, window_bounds = array<i64: 32, 128>}, {pipeline_mode = #tpu.pipeline_mode<synchronous>, transform_indices = @transform_2, window_bounds = array<i64: 1, 128>}, {pipeline_mode = #tpu.pipeline_mode<synchronous>, transform_indices = @transform_3, window_bounds = array<i64: 128, 128>}, {pipeline_mode = #tpu.pipeline_mode<synchronous>, transform_indices = @transform_4, window_bounds = array<i64: 1, 128>}, {transform_indices = @transform_5, window_bounds = array<i64: 64, 128>}]} {
    %c0 = arith.constant 0 : index
    %c0_0 = arith.constant 0 : index
    %0 = vector.load %arg1[%c0, %c0_0] : memref<64x32xf32, #tpu.memory_space<vmem>>, vector<64x32xf32>
    %c0_1 = arith.constant 0 : index
    %c0_2 = arith.constant 0 : index
    %1 = vector.load %arg2[%c0_1, %c0_2] : memref<32x128xf32, #tpu.memory_space<vmem>>, vector<32x128xf32>
    %cst = arith.constant dense<0.000000e+00> : vector<64x128xf32>
    %2 = tpu.matmul %0, %1, %cst {dimension_numbers = #tpu.dot_dimension_numbers<[1], [0], [0], [1], [0, 0, 1, 1], [], []>} : vector<64x32xf32>, vector<32x128xf32>, vector<64x128xf32> -> vector<64x128xf32>
    %c0_3 = arith.constant 0 : index
    %c0_4 = arith.constant 0 : index
    %3 = vector.load %arg3[%c0_3, %c0_4] : memref<1x128xf32, #tpu.memory_space<vmem>>, vector<1x128xf32>
    %4 = vector.broadcast %3 : vector<1x128xf32> to vector<64x128xf32>
    %5 = arith.addf %2, %4 : vector<64x128xf32>
    %cst_5 = arith.constant 0.000000e+00 : f32
    %6 = vector.broadcast %cst_5 : f32 to vector<64x128xf32>
    %7 = arith.maximumf %5, %6 : vector<64x128xf32>
    %c0_6 = arith.constant 0 : index
    %c0_7 = arith.constant 0 : index
    %8 = vector.load %arg4[%c0_6, %c0_7] : memref<128x128xf32, #tpu.memory_space<vmem>>, vector<128x128xf32>
    %cst_8 = arith.constant dense<0.000000e+00> : vector<64x128xf32>
    %9 = tpu.matmul %7, %8, %cst_8 {dimension_numbers = #tpu.dot_dimension_numbers<[1], [0], [0], [1], [0, 0, 1, 1], [], []>} : vector<64x128xf32>, vector<128x128xf32>, vector<64x128xf32> -> vector<64x128xf32>
    %c0_9 = arith.constant 0 : index
    %c0_10 = arith.constant 0 : index
    %10 = vector.load %arg5[%c0_9, %c0_10] : memref<1x128xf32, #tpu.memory_space<vmem>>, vector<1x128xf32>
    %11 = vector.broadcast %10 : vector<1x128xf32> to vector<64x128xf32>
    %12 = arith.addf %9, %11 : vector<64x128xf32>
    %cst_11 = arith.constant dense<0xFF800000> : vector<64xf32>
    %13 = vector.multi_reduction <maximumf>, %12, %cst_11 [1] : vector<64x128xf32> to vector<64xf32>
    %14 = vector.shape_cast %13 : vector<64xf32> to vector<64x1xf32>
    %15 = vector.broadcast %14 : vector<64x1xf32> to vector<64x128xf32>
    %16 = arith.subf %12, %15 : vector<64x128xf32>
    %17 = math.exp %16 : vector<64x128xf32>
    %cst_12 = arith.constant dense<0.000000e+00> : vector<64xf32>
    %18 = vector.multi_reduction <add>, %17, %cst_12 [1] : vector<64x128xf32> to vector<64xf32>
    %19 = vector.shape_cast %18 : vector<64xf32> to vector<64x1xf32>
    %20 = tpu.reciprocal %19 {approx = true} : vector<64x1xf32> -> vector<64x1xf32>
    %21 = arith.mulf %19, %20 : vector<64x1xf32>
    %cst_13 = arith.constant 2.000000e+00 : f32
    %22 = vector.broadcast %cst_13 : f32 to vector<64x1xf32>
    %23 = arith.subf %22, %21 : vector<64x1xf32>
    %24 = arith.mulf %20, %23 : vector<64x1xf32>
    %25 = vector.broadcast %24 : vector<64x1xf32> to vector<64x128xf32>
    %26 = arith.mulf %17, %25 : vector<64x128xf32>
    %c0_14 = arith.constant 0 : index
    %c0_15 = arith.constant 0 : index
    %27 = vector.load %arg6[%c0_14, %c0_15] : memref<64x128xf32, #tpu.memory_space<vmem>>, vector<64x128xf32>
    tpu.vector_store %arg6[%c0_14, %c0_15], %26 {strides = array<i32>} : memref<64x128xf32, #tpu.memory_space<vmem>>, vector<64x128xf32>,
    return
  }
  func.func @transform_0(%arg0: i32) -> (i32, i32) {
    %c0_i32 = arith.constant 0 : i32
    %c0_i32_0 = arith.constant 0 : i32
    return %arg0, %c0_i32 : i32, i32
  }
  func.func @transform_1(%arg0: i32) -> (i32, i32) {
    %c0_i32 = arith.constant 0 : i32
    %c0_i32_0 = arith.constant 0 : i32
    %c0_i32_1 = arith.constant 0 : i32
    return %c0_i32, %c0_i32_0 : i32, i32
  }
  func.func @transform_2(%arg0: i32) -> (i32, i32) {
    %c0_i32 = arith.constant 0 : i32
    %c0_i32_0 = arith.constant 0 : i32
    %c0_i32_1 = arith.constant 0 : i32
    return %c0_i32, %c0_i32_0 : i32, i32
  }
  func.func @transform_3(%arg0: i32) -> (i32, i32) {
    %c0_i32 = arith.constant 0 : i32
    %c0_i32_0 = arith.constant 0 : i32
    %c0_i32_1 = arith.constant 0 : i32
    return %c0_i32, %c0_i32_0 : i32, i32
  }
  func.func @transform_4(%arg0: i32) -> (i32, i32) {
    %c0_i32 = arith.constant 0 : i32
    %c0_i32_0 = arith.constant 0 : i32
    %c0_i32_1 = arith.constant 0 : i32
    return %c0_i32, %c0_i32_0 : i32, i32
  }
  func.func @transform_5(%arg0: i32) -> (i32, i32) {
    %c0_i32 = arith.constant 0 : i32
    %c0_i32_0 = arith.constant 0 : i32
    return %arg0, %c0_i32 : i32, i32
  }
}

module attributes {stable_mosaic.version = 11 : i64} {
  func.func @mlp_kernel(%arg0: i32, %arg1: memref<64x32xf32, #tpu.memory_space<vmem>>, %arg2: memref<32x128xf32, #tpu.memory_space<vmem>>, %arg3: memref<1x128xf32, #tpu.memory_space<vmem>>, %arg4: memref<128x128xf32, #tpu.memory_space<vmem>>, %arg5: memref<1x128xf32, #tpu.memory_space<vmem>>, %arg6: memref<64x128xf32, #tpu.memory_space<vmem>>) attributes {dimension_semantics = [#tpu.dimension_semantics<parallel>], iteration_bounds = array<i64: 1>, scalar_prefetch = 0 : i64, scratch_operands = 0 : i64, tpu.core_type = #tpu.core_type<tc>, window_params = [{transform_indices = @transform_0, window_bounds = array<i64: 64, 32>}, {pipeline_mode = #tpu.pipeline_mode<synchronous>, transform_indices = @transform_1, window_bounds = array<i64: 32, 128>}, {pipeline_mode = #tpu.pipeline_mode<synchronous>, transform_indices = @transform_2, window_bounds = array<i64: 1, 128>}, {pipeline_mode = #tpu.pipeline_mode<synchronous>, transform_indices = @transform_3, window_bounds = array<i64: 128, 128>}, {pipeline_mode = #tpu.pipeline_mode<synchronous>, transform_indices = @transform_4, window_bounds = array<i64: 1, 128>}, {transform_indices = @transform_5, window_bounds = array<i64: 64, 128>}]} {
    %c0 = arith.constant 0 : index
    %c0_0 = arith.constant 0 : index
    %0 = vector.load %arg1[%c0, %c0_0] : memref<64x32xf32, #tpu.memory_space<vmem>>, vector<64x32xf32>
    %c0_1 = arith.constant 0 : index
    %c0_2 = arith.constant 0 : index
    %1 = vector.load %arg2[%c0_1, %c0_2] : memref<32x128xf32, #tpu.memory_space<vmem>>, vector<32x128xf32>
    %cst = arith.constant dense<0.000000e+00> : vector<64x128xf32>
    %2 = tpu.matmul %0, %1, %cst {dimension_numbers = #tpu.dot_dimension_numbers<[1], [0], [0], [1], [0, 0, 1, 1], [], []>} : vector<64x32xf32>, vector<32x128xf32>, vector<64x128xf32> -> vector<64x128xf32>
    %c0_3 = arith.constant 0 : index
    %c0_4 = arith.constant 0 : index
    %3 = vector.load %arg3[%c0_3, %c0_4] : memref<1x128xf32, #tpu.memory_space<vmem>>, vector<1x128xf32>
    %4 = vector.broadcast %3 : vector<1x128xf32> to vector<64x128xf32>
    %5 = arith.addf %2, %4 : vector<64x128xf32>
    %cst_5 = arith.constant 0.000000e+00 : f32
    %6 = vector.broadcast %cst_5 : f32 to vector<64x128xf32>
    %7 = arith.maximumf %5, %6 : vector<64x128xf32>
    %c0_6 = arith.constant 0 : index
    %c0_7 = arith.constant 0 : index
    %8 = vector.load %arg4[%c0_6, %c0_7] : memref<128x128xf32, #tpu.memory_space<vmem>>, vector<128x128xf32>
    %cst_8 = arith.constant dense<0.000000e+00> : vector<64x128xf32>
    %9 = tpu.matmul %7, %8, %cst_8 {dimension_numbers = #tpu.dot_dimension_numbers<[1], [0], [0], [1], [0, 0, 1, 1], [], []>} : vector<64x128xf32>, vector<128x128xf32>, vector<64x128xf32> -> vector<64x128xf32>
    %c0_9 = arith.constant 0 : index
    %c0_10 = arith.constant 0 : index
    %10 = vector.load %arg5[%c0_9, %c0_10] : memref<1x128xf32, #tpu.memory_space<vmem>>, vector<1x128xf32>
    %11 = vector.broadcast %10 : vector<1x128xf32> to vector<64x128xf32>
    %12 = arith.addf %9, %11 : vector<64x128xf32>
    %cst_11 = arith.constant dense<0xFF800000> : vector<64xf32>
    %13 = vector.multi_reduction <maximumf>, %12, %cst_11 [1] : vector<64x128xf32> to vector<64xf32>
    %14 = vector.shape_cast %13 : vector<64xf32> to vector<64x1xf32>
    %15 = vector.broadcast %14 : vector<64x1xf32> to vector<64x128xf32>
    %16 = arith.subf %12, %15 : vector<64x128xf32>
    %17 = math.exp %16 : vector<64x128xf32>
    %cst_12 = arith.constant dense<0.000000e+00> : vector<64xf32>
    %18 = vector.multi_reduction <add>, %17, %cst_12 [1] : vector<64x128xf32> to vector<64xf32>
    %19 = vector.shape_cast %18 : vector<64xf32> to vector<64x1xf32>
    %20 = tpu.reciprocal %19 {approx = true} : vector<64x1xf32> -> vector<64x1xf32>
    %21 = arith.mulf %19, %20 : vector<64x1xf32>
    %cst_13 = arith.constant 2.000000e+00 : f32
    %22 = vector.broadcast %cst_13 : f32 to vector<64x1xf32>
    %23 = arith.subf %22, %21 : vector<64x1xf32>
    %24 = arith.mulf %20, %23 : vector<64x1xf32>
    %25 = vector.broadcast %24 : vector<64x1xf32> to vector<64x128xf32>
    %26 = arith.mulf %17, %25 : vector<64x128xf32>
    %c0_14 = arith.constant 0 : index
    %c0_15 = arith.constant 0 : index
    %27 = vector.load %arg6[%c0_14, %c0_15] : memref<64x128xf32, #tpu.memory_space<vmem>>, vector<64x128xf32>
    tpu.vector_store %arg6[%c0_14, %c0_15], %26 {strides = array<i32>} : memref<64x128xf32, #tpu.memory_space<vmem>>, vector<64x128xf32>,
    return
  }
  func.func @transform_0(%arg0: i32) -> (i32, i32) {
    %c0_i32 = arith.constant 0 : i32
    %c0_i32_0 = arith.constant 0 : i32
    return %arg0, %c0_i32 : i32, i32
  }
  func.func @transform_1(%arg0: i32) -> (i32, i32) {
    %c0_i32 = arith.constant 0 : i32
    %c0_i32_0 = arith.constant 0 : i32
    %c0_i32_1 = arith.constant 0 : i32
    return %c0_i32, %c0_i32_0 : i32, i32
  }
  func.func @transform_2(%arg0: i32) -> (i32, i32) {
    %c0_i32 = arith.constant 0 : i32
    %c0_i32_0 = arith.constant 0 : i32
    %c0_i32_1 = arith.constant 0 : i32
    return %c0_i32, %c0_i32_0 : i32, i32
  }
  func.func @transform_3(%arg0: i32) -> (i32, i32) {
    %c0_i32 = arith.constant 0 : i32
    %c0_i32_0 = arith.constant 0 : i32
    %c0_i32_1 = arith.constant 0 : i32
    return %c0_i32, %c0_i32_0 : i32, i32
  }
  func.func @transform_4(%arg0: i32) -> (i32, i32) {
    %c0_i32 = arith.constant 0 : i32
    %c0_i32_0 = arith.constant 0 : i32
    %c0_i32_1 = arith.constant 0 : i32
    return %c0_i32, %c0_i32_0 : i32, i32
  }
  func.func @transform_5(%arg0: i32) -> (i32, i32) {
    %c0_i32 = arith.constant 0 : i32
    %c0_i32_0 = arith.constant 0 : i32
    return %arg0, %c0_i32 : i32, i32
  }
}

</mosaic_0001>

<bundles_post_ra>
// kernel: tpu_custom_call.1
= control target key start
LH: loop header
LB: loop body
LE: loop exit
PB: predicated region body
PF: predicated region fallthrough
CT: control target
= control target key end

     0   :  { %10 = vsyncpa [#allocation3], 0  ;;  %s984_s0 = inlined_call_operand.hbm [shape: f32[64,32], index: 0, kind: input, shape index: {}]   ;;  %s985_s1 = inlined_call_operand.hbm [shape: f32[32,128], index: 1, kind: input, shape index: {}]   ;;  %s986_s2 = inlined_call_operand.hbm [shape: f32[1,128], index: 2, kind: input, shape index: {}]   ;;  %s987_s3 = inlined_call_operand.hbm [shape: f32[128,128], index: 3, kind: input, shape index: {}]   ;;  %s988_s4 = inlined_call_operand.hbm [shape: f32[1,128], index: 4, kind: input, shape index: {}]   ;;  %s989_s5 = inlined_call_operand.hbm [shape: f32[64,128], index: 5, kind: output, shape index: {}]  }
   0x1   :  { %11 = vsyncpa [#allocation6], 0 }
   0x2   :  { %12 = vsyncpa [#allocation9], 0 }
   0x3   :  { %13 = vsyncpa [#allocation4], 0  ;;  %s839_s18 = smov [#allocation5]   ;;  %s840_s20 = smov [#allocation8]  }
   0x4   :  { %s31_s19 = sshll.u32 %s839_s18, 4  ;;  %s53_s21 = sshll.u32 %s840_s20, 4  ;;  %s32_s19 = int_to_ptr.vmem [resolvable:$true] %s31_s19  ;;  %s877_s21 = int_to_ptr.vmem [resolvable:$true] %s53_s21 }
   0x5   :  { %s699_s24 = scalar_lea.hbm %s985_s1, 512 }
   0x6   :  { %p700_p0 = scmp.ne.s32.totalorder %s985_s1, %s699_s24  ;;  %p703_p1 = scmp.lt.u32.totalorder %s699_s24, %s985_s1 }
   0x8   :  { %p705_p2 = pnand %p703_p1, %p700_p0 }
   0xa   :  { %708 = shalt.err (!%p705_p2)
}
   0xb   :  { %s709_s29 = scalar_lea.vmem %s32_s19, 512  ;;  %p714_p4 = scmp.lt.s32.totalorder %s32_s19, %s32_s19 }
   0xc   :  { %p710_p3 = scmp.ne.s32.totalorder %s32_s19, %s709_s29  ;;  %p715_p5 = scmp.lt.s32.totalorder %s709_s29, %s709_s29 }
   0xe   :  { %p716_p6 = por %p715_p5, %p714_p4 }
  0x10   :  { %p717_p7 = pnand %p716_p6, %p710_p3 }
  0x12   :  { %720 = shalt.err (!%p717_p7)
}
  0x13   :  { %s841_s30 = smov 128   ;;  %s842_s6 = smov 8  }
  0x14   :  { %37 = dma.hbm_to_vmem [thread:$0]  %s985_s1, 512, %s32_s19, [#allocation6], %s841_s30, %s841_s30, %s842_s6  }
  0x15   :  { %s721_s11 = scalar_lea.hbm %s987_s3, 2048 }
  0x16   :  { %p722_p8 = scmp.ne.s32.totalorder %s987_s3, %s721_s11  ;;  %p725_p9 = scmp.lt.u32.totalorder %s721_s11, %s987_s3 }
  0x18   :  { %p727_p10 = pnand %p725_p9, %p722_p8 }
  0x1a   :  { %730 = shalt.err (!%p727_p10)
}
  0x1b   :  { %s731_s16 = scalar_lea.vmem %s877_s21, 2048  ;;  %p736_p12 = scmp.lt.s32.totalorder %s877_s21, %s877_s21 }
  0x1c   :  { %p732_p11 = scmp.ne.s32.totalorder %s877_s21, %s731_s16  ;;  %p737_p13 = scmp.lt.s32.totalorder %s731_s16, %s731_s16 }
  0x1e   :  { %p738_p0 = por %p737_p13, %p736_p12 }
  0x20   :  { %p739_p1 = pnand %p738_p0, %p732_p11 }
  0x22   :  { %742 = shalt.err (!%p739_p1)
}
  0x23   :  { %59 = dma.hbm_to_vmem [thread:$0]  %s987_s3, 2048, %s877_s21, [#allocation9], %s841_s30, %s841_s30, %s842_s6  }
  0x24   :  { %s843_s18 = smov [#allocation2]   ;;  %s844_s20 = smov [#allocation7]  }
  0x25   :  { %s19_s19 = sshll.u32 %s843_s18, 4  ;;  %s44_s22 = sshll.u32 %s844_s20, 4  ;;  %s20_s19 = int_to_ptr.vmem [resolvable:$true] %s19_s19  ;;  %s45_s22 = int_to_ptr.vmem [resolvable:$true] %s44_s22 }
  0x26   :  { %s743_s25 = scalar_lea.hbm %s984_s0, 1024 }
  0x27   :  { %p744_p2 = scmp.ne.s32.totalorder %s984_s0, %s743_s25  ;;  %p747_p3 = scmp.lt.u32.totalorder %s743_s25, %s984_s0 }
  0x29   :  { %p749_p4 = pnand %p747_p3, %p744_p2 }
  0x2b   :  { %752 = shalt.err (!%p749_p4)
}
  0x2c   :  { %s753_s3 = scalar_lea.vmem %s20_s19, 1024  ;;  %p758_p6 = scmp.lt.s32.totalorder %s20_s19, %s20_s19 }
  0x2d   :  { %p754_p5 = scmp.ne.s32.totalorder %s20_s19, %s753_s3  ;;  %p759_p7 = scmp.lt.s32.totalorder %s753_s3, %s753_s3 }
  0x2f   :  { %p760_p8 = por %p759_p7, %p758_p6 }
  0x31   :  { %p761_p9 = pnand %p760_p8, %p754_p5 }
  0x33   :  { %764 = shalt.err (!%p761_p9)
}
  0x34   :  { %25 = dma.hbm_to_vmem [thread:$0]  %s984_s0, 1024, %s20_s19, [#allocation3], %s841_s30, %s841_s30, %s842_s6  }
  0x35   :  { %s765_s10 = scalar_lea.hbm %s986_s2, 16 }
  0x36   :  { %p766_p10 = scmp.ne.s32.totalorder %s986_s2, %s765_s10  ;;  %p769_p11 = scmp.lt.u32.totalorder %s765_s10, %s986_s2 }
  0x38   :  { %p771_p12 = pnand %p769_p11, %p766_p10 }
  0x3a   :  { %774 = shalt.err (!%p771_p12)
}
  0x3b   :  { %s775_s15 = scalar_lea.vmem %s45_s22, 16  ;;  %s779_s16 = scalar_lea.vmem %s45_s22, 32 }
  0x3c   :  { %p776_p13 = scmp.ne.s32.totalorder %s45_s22, %s775_s15  ;;  %p780_p0 = scmp.lt.s32.totalorder %s45_s22, %s45_s22 }
  0x3d   :  { %p781_p1 = scmp.lt.s32.totalorder %s779_s16, %s775_s15 }
  0x3f   :  { %p782_p2 = por %p781_p1, %p780_p0 }
  0x41   :  { %p783_p3 = pnand %p782_p2, %p776_p13 }
  0x43   :  { %786 = shalt.err (!%p783_p3)
}
  0x44   :  { %47 = dma.hbm_to_vmem [thread:$0]  %s986_s2, 16, %s45_s22, [#allocation6]  }
  0x45   :  { %s845_s17 = smov [#allocation10]   ;;  %s787_s23 = scalar_lea.hbm %s988_s4, 16 }
  0x46   :  { %s66_s18 = sshll.u32 %s845_s17, 4  ;;  %p788_p4 = scmp.ne.s32.totalorder %s988_s4, %s787_s23  ;;  %s67_s18 = int_to_ptr.vmem [resolvable:$true] %s66_s18 }
  0x47   :  { %p791_p5 = scmp.lt.u32.totalorder %s787_s23, %s988_s4 }
  0x49   :  { %p793_p6 = pnand %p791_p5, %p788_p4 }
  0x4b   :  { %796 = shalt.err (!%p793_p6)
}
  0x4c   :  { %s797_s28 = scalar_lea.vmem %s67_s18, 16  ;;  %s801_s2 = scalar_lea.vmem %s67_s18, 32 }
  0x4d   :  { %p798_p7 = scmp.ne.s32.totalorder %s67_s18, %s797_s28  ;;  %p802_p8 = scmp.lt.s32.totalorder %s67_s18, %s67_s18 }
  0x4e   :  { %p803_p9 = scmp.lt.s32.totalorder %s801_s2, %s797_s28 }
  0x50   :  { %p804_p10 = por %p803_p9, %p802_p8 }
  0x52   :  { %p805_p11 = pnand %p804_p10, %p798_p7 }
  0x54   :  { %808 = shalt.err (!%p805_p11)
}
  0x55   :  { %69 = dma.hbm_to_vmem [thread:$0]  %s988_s4, 16, %s67_s18, [#allocation9]  }
  0x56   :  { %831 = dma.done.wait [#allocation3], 1024  }
  0x57   :  { %832 = vsyncadd [#allocation3], 4294966272 }
  0x58   :  { %833 = dma.done.wait [#allocation6], 528  }
  0x59   :  { %834 = vsyncadd [#allocation6], 4294966768 }
  0x5a   :  { %835 = dma.done.wait [#allocation9], 2064  }
  0x5b   :  { %836 = vsyncadd [#allocation9], 4294965232  ;;  %vm104_vm0 = vcmask 261120   ;;  %v93_v0 = vld [vmem:[#allocation5] sm:$0xff]  ;;  %v94_v1 = vld [vmem:[#allocation5 + $0x8] sm:$0xff]  ;;  %s846_s4 = smov [#allocation11]  }
  0x5c   :  { %v95_v2 = vld [vmem:[#allocation5 + $0x10] sm:$0xff]  ;;  %v603_v3 = vpack.c.bf16 %v94_v1, %v93_v0  ;;  %v96_v4 = vld [vmem:[#allocation5 + $0x18] sm:$0xff]  ;;  %v85_v5 = vld [vmem:[#allocation2] sm:$0xff]  ;;  %s479_s3 = sshll.u32 %s846_s4, 4  ;;  %s480_s3 = int_to_ptr.vmem [resolvable:$true] %s479_s3 }
  0x5d   :  { %v607_v6 = vpack.c.bf16 %v96_v4, %v95_v2  ;;  %547 = vmatprep.mubr.msk.f32.mxu0 %vm104_vm0, %v85_v5  ;;  %v242_v7 = vld [vmem:[#allocation8] sm:$0xff]  ;;  %v243_v8 = vld [vmem:[#allocation8 + $0x8] sm:$0xff]  ;;  %v244_v9 = vld [vmem:[#allocation8 + $0x10] sm:$0xff]  ;;  %s809_s21 = scalar_lea.vmem %s480_s3, 1024  ;;  %p814_p13 = scmp.lt.s32.totalorder %s480_s3, %s480_s3 }
  0x5e   :  { %604 = vmatprep.subr.bf16.mxu0 %v603_v3  ;;  %v611_v10 = vpack.c.bf16 %v243_v8, %v242_v7  ;;  %v245_v11 = vld [vmem:[#allocation8 + $0x18] sm:$0xff]  ;;  %v86_v13 = vld [vmem:[#allocation2 + $0x8] sm:$0xff]  ;;  %v87_v14 = vld [vmem:[#allocation2 + $0x10] sm:$0xff]  ;;  %p810_p12 = scmp.ne.s32.totalorder %s480_s3, %s809_s21  ;;  %p815_p0 = scmp.lt.s32.totalorder %s809_s21, %s809_s21 }
  0x5f   :  { %606 = vmatpush3.bf16.msra.mxu0 %v603_v3  ;;  %v615_v12 = vpack.c.bf16 %v245_v11, %v244_v9  ;;  %v246_v15 = vld [vmem:[#allocation8 + $0x20] sm:$0xff]  ;;  %v247_v16 = vld [vmem:[#allocation8 + $0x28] sm:$0xff]  ;;  %v88_v17 = vld [vmem:[#allocation2 + $0x18] sm:$0xff] }
  0x60   :  { %608 = vmatprep.subr.bf16.mxu0 %v607_v6  ;;  %643 = vmatprep.subr.bf16.mxu1 %v611_v10  ;;  %v619_v18 = vpack.c.bf16 %v247_v16, %v246_v15  ;;  %v89_v19 = vld [vmem:[#allocation2 + $0x20] sm:$0xff]  ;;  %v248_v20 = vld [vmem:[#allocation8 + $0x30] sm:$0xff]  ;;  %v90_v22 = vld [vmem:[#allocation2 + $0x28] sm:$0xff]  ;;  %p816_p1 = por %p815_p0, %p814_p13 }
  0x61   :  { %651 = vmatpush3.bf16.msra.mxu1 %v611_v10  ;;  %v249_v21 = vld [vmem:[#allocation8 + $0x38] sm:$0xff]  ;;  %v91_v24 = vld [vmem:[#allocation2 + $0x30] sm:$0xff]  ;;  %v250_v25 = vld [vmem:[#allocation8 + $0x40] sm:$0xff] }
  0x62   :  { %644 = vmatprep.subr.bf16.mxu1 %v615_v12  ;;  %v623_v23 = vpack.c.bf16 %v249_v21, %v248_v20  ;;  %v251_v26 = vld [vmem:[#allocation8 + $0x48] sm:$0xff]  ;;  %v92_v27 = vld [vmem:[#allocation2 + $0x38] sm:$0xff]  ;;  %v254_v32 = vld [vmem:[#allocation8 + $0x60] sm:$0xff]  ;;  %p817_p2 = pnand %p816_p1, %p810_p12 }
  0x63   :  { %610 = vmatpush3.bf16.msra.mxu0 %v607_v6  ;;  %v627_v28 = vpack.c.bf16 %v251_v26, %v250_v25  ;;  %v252_v29 = vld [vmem:[#allocation8 + $0x50] sm:$0xff]  ;;  %v253_v30 = vld [vmem:[#allocation8 + $0x58] sm:$0xff]  ;;  %v255_v33 = vld [vmem:[#allocation8 + $0x68] sm:$0xff] }
  0x64   :  { %612 = vmatprep.subr.bf16.mxu0 %v611_v10  ;;  %v631_v31 = vpack.c.bf16 %v253_v30, %v252_v29  ;;  %v635_v34 = vpack.c.bf16 %v255_v33, %v254_v32  ;;  %v256_v35 = vld [vmem:[#allocation8 + $0x70] sm:$0xff]  ;;  %v257_v36 = vld [vmem:[#allocation8 + $0x78] sm:$0xff]  ;;  %v502_v63 = vld [vmem:[#allocation10] ss:$0 sm:$0xff] }
  0x65   :  { %652 = vmatpush3.bf16.msra.mxu1 %v615_v12  ;;  %v639_v37 = vpack.c.bf16 %v257_v36, %v256_v35  ;;  %v493_v38 = vld [vmem:[#allocation7] ss:$0 sm:$0xff] }
  0x66   :  { %548 = vmatmul.mubr.msk.f32.vlgmr.msra.gmra.mrb[0].mxu0 %vm104_vm0, %v86_v13  ;;  %645 = vmatprep.subr.bf16.mxu1 %v619_v18 }
  0x67   :  { %550 = vmatprep.mubr.msk.f32.mxu0 %vm104_vm0, %v87_v14  ;;  %614 = vmatpush3.bf16.msra.mxu0 %v611_v10 }
  0x68   :  { %616 = vmatprep.subr.bf16.mxu0 %v615_v12 }
  0x69   :  { %653 = vmatpush3.bf16.msra.mxu1 %v619_v18 }
  0x6a   :  { %551 = vmatmul.mubr.msk.f32.gmra.mrb[2].mxu0 %vm104_vm0, %v88_v17  ;;  %646 = vmatprep.subr.bf16.mxu1 %v623_v23 }
  0x6b   :  { %553 = vmatprep.mubr.msk.f32.mxu0 %vm104_vm0, %v89_v19  ;;  %618 = vmatpush3.bf16.msra.mxu0 %v615_v12 }
  0x6c   :  { %620 = vmatprep.subr.bf16.mxu0 %v619_v18 }
  0x6d   :  { %654 = vmatpush3.bf16.msra.mxu1 %v623_v23 }
  0x6e   :  { %554 = vmatmul.mubr.msk.f32.gmra.mrb[4].mxu0 %vm104_vm0, %v90_v22  ;;  %647 = vmatprep.subr.bf16.mxu1 %v627_v28 }
  0x6f   :  { %556 = vmatprep.mubr.msk.f32.mxu0 %vm104_vm0, %v91_v24  ;;  %622 = vmatpush3.bf16.msra.mxu0 %v619_v18 }
  0x70   :  { %624 = vmatprep.subr.bf16.mxu0 %v623_v23 }
  0x71   :  { %655 = vmatpush3.bf16.msra.mxu1 %v627_v28 }
  0x72   :  { %557 = vmatmul.mubr.msk.f32.gmra.mrb[6].mxu0 %vm104_vm0, %v92_v27  ;;  %648 = vmatprep.subr.bf16.mxu1 %v631_v31 }
  0x73   :  { %626 = vmatpush3.bf16.msra.mxu0 %v623_v23 }
  0x74   :  { %628 = vmatprep.subr.bf16.mxu0 %v627_v28 }
  0x75   :  { %656 = vmatpush3.bf16.msra.mxu1 %v631_v31 }
  0x76   :  { %649 = vmatprep.subr.bf16.mxu1 %v635_v34 }
  0x77   :  { %630 = vmatpush3.bf16.msra.mxu0 %v627_v28 }
  0x78   :  { %632 = vmatprep.subr.bf16.mxu0 %v631_v31 }
  0x79   :  { %657 = vmatpush3.bf16.msra.mxu1 %v635_v34 }
  0x7a   :  { %650 = vmatprep.subr.bf16.mxu1 %v639_v37 }
  0x7b   :  { %634 = vmatpush3.bf16.msra.mxu0 %v631_v31 }
  0x7c   :  { %636 = vmatprep.subr.bf16.mxu0 %v635_v34 }
  0x7d   :  { %658 = vmatpush3.bf16.msra.mxu1 %v639_v37 }
  0x7f   :  { %638 = vmatpush3.bf16.msra.mxu0 %v635_v34 }
  0x80   :  { %640 = vmatprep.subr.bf16.mxu0 %v639_v37 }
  0x83   :  { %642 = vmatpush3.bf16.msra.mxu0 %v639_v37 }
 0x139   :  { %v549_v39 = vpop.f32.mrb[0].mxu0 }
 0x13a   :  { %v201_v40 = vadd.f32 %v549_v39, %v493_v38  ;;  %v195_v41 = vpop.f32.mrb[1].mxu0 }
 0x13b   :  { %v196_v42 = vadd.f32 %v493_v38, %v195_v41 }
 0x13c   :  { %v235_v45 = vmax.f32 %v201_v40, 0.0 }
 0x13d   :  { %v234_v43 = vmax.f32 %v196_v42, 0.0  ;;  %v552_v44 = vpop.f32.mrb[2].mxu0 }
 0x13e   :  { %v211_v46 = vadd.f32 %v552_v44, %v493_v38  ;;  %v205_v47 = vpop.f32.mrb[3].mxu0 }
 0x13f   :  { %591 = vmatprep.mubr.f32.mxu0 %v234_v43  ;;  %v206_v48 = vadd.f32 %v493_v38, %v205_v47 }
 0x140   :  { %592 = vmatmul.mubr.f32.vlgmr.msra.gmra.mrb[8].mxu0 %v235_v45  ;;  %v237_v51 = vmax.f32 %v211_v46, 0.0 }
 0x141   :  { %v555_v49 = vpop.f32.mrb[4].mxu0  ;;  %v236_v50 = vmax.f32 %v206_v48, 0.0 }
 0x142   :  { %v221_v52 = vadd.f32 %v555_v49, %v493_v38  ;;  %v215_v53 = vpop.f32.mrb[5].mxu0 }
 0x143   :  { %v216_v54 = vadd.f32 %v493_v38, %v215_v53  ;;  %594 = vmatprep.mubr.f32.mxu1 %v236_v50 }
 0x144   :  { %v239_v55 = vmax.f32 %v221_v52, 0.0  ;;  %595 = vmatmul.mubr.f32.vlgmr.msra.gmra.mrb[0].mxu1 %v237_v51 }
 0x145   :  { %v238_v56 = vmax.f32 %v216_v54, 0.0  ;;  %v558_v57 = vpop.f32.mrb[6].mxu0 }
 0x146   :  { %v231_v58 = vadd.f32 %v558_v57, %v493_v38  ;;  %v225_v59 = vpop.f32.mrb[7].mxu0 }
 0x147   :  { %v226_v60 = vadd.f32 %v493_v38, %v225_v59  ;;  %597 = vmatprep.mubr.f32.mxu1 %v238_v56 }
 0x148   :  { %v241_v61 = vmax.f32 %v231_v58, 0.0  ;;  %598 = vmatmul.mubr.f32.gmra.mrb[2].mxu1 %v239_v55 }
 0x149   :  { %v240_v62 = vmax.f32 %v226_v60, 0.0 }
 0x14b   :  { %600 = vmatprep.mubr.f32.mxu1 %v240_v62 }
 0x14c   :  { %601 = vmatmul.mubr.f32.gmra.mrb[4].mxu1 %v241_v61 }
 0x213   :  { %v593_v0 = vpop.f32.mrb[8].mxu0 }
 0x214   :  { %v337_v1 = vadd.f32 %v593_v0, %v502_v63  ;;  %v331_v2 = vpop.f32.mrb[9].mxu0 }
 0x215   :  { %v332_v4 = vadd.f32 %v502_v63, %v331_v2 }
 0x216   :  { %372 = vmax.xlane.f32.xlu0 %v337_v1 }
 0x217   :  { %v596_v3 = vpop.f32.mrb[0].mxu1 }
 0x218   :  { %v347_v5 = vadd.f32 %v596_v3, %v502_v63  ;;  %v341_v6 = vpop.f32.mrb[1].mxu1 }
 0x219   :  { %v342_v8 = vadd.f32 %v502_v63, %v341_v6 }
 0x21a   :  { %376 = vmax.xlane.f32.xlu1 %v347_v5  ;;  %370 = vmax.xlane.f32.xlu0 %v332_v4 }
 0x21b   :  { %v599_v7 = vpop.f32.mrb[2].mxu1 }
 0x21c   :  { %v351_v9 = vpop.f32.mrb[3].mxu1  ;;  %v357_v12 = vadd.f32 %v599_v7, %v502_v63 }
 0x21d   :  { %v352_v10 = vadd.f32 %v502_v63, %v351_v9 }
 0x21e   :  { %374 = vmax.xlane.f32.xlu1 %v342_v8 }
 0x21f   :  { %v602_v11 = vpop.f32.mrb[4].mxu1  ;;  %378 = vmax.xlane.f32.xlu0 %v352_v10 }
 0x220   :  { %v361_v13 = vpop.f32.mrb[5].mxu1  ;;  %v367_v15 = vadd.f32 %v602_v11, %v502_v63 }
 0x221   :  { %v362_v14 = vadd.f32 %v502_v63, %v361_v13 }
 0x222   :  { %380 = vmax.xlane.f32.xlu1 %v357_v12 }
 0x223   :  { %382 = vmax.xlane.f32.xlu0 %v362_v14 }
 0x226   :  { %384 = vmax.xlane.f32.xlu1 %v367_v15 }
 0x2a3   :  { %v373_v16 = vpop.xlane.xlu0 %372 }
 0x2a4   :  { %v387_v17 = vsub.f32 %v337_v1, %v373_v16 }
 0x2a6   :  { %v396_v18 = vmul.f32 1.442695, %v387_v17 }
 0x2a7   :  { %v377_v19 = vpop.xlane.xlu1 %376  ;;  %v371_v20 = vpop.xlane.xlu0 %370 }
 0x2a8   :  { %667 = vpow2.f32 %v396_v18  ;;  %v389_v21 = vsub.f32 %v347_v5, %v377_v19  ;;  %v386_v22 = vsub.f32 %v332_v4, %v371_v20 }
 0x2aa   :  { %v400_v23 = vmul.f32 1.442695, %v389_v21  ;;  %v394_v24 = vmul.f32 1.442695, %v386_v22 }
 0x2ab   :  { %v375_v25 = vpop.xlane.xlu1 %374 }
 0x2ac   :  { %669 = vpow2.f32 %v400_v23  ;;  %v388_v26 = vsub.f32 %v342_v8, %v375_v25  ;;  %v379_v27 = vpop.xlane.xlu0 %378 }
 0x2ad   :  { %671 = vpow2.f32 %v394_v24  ;;  %v390_v28 = vsub.f32 %v352_v10, %v379_v27 }
 0x2ae   :  { %v398_v29 = vmul.f32 1.442695, %v388_v26 }
 0x2af   :  { %v381_v30 = vpop.xlane.xlu1 %380  ;;  %v402_v33 = vmul.f32 1.442695, %v390_v28 }
 0x2b0   :  { %673 = vpow2.f32 %v398_v29  ;;  %v391_v31 = vsub.f32 %v357_v12, %v381_v30  ;;  %v383_v32 = vpop.xlane.xlu0 %382 }
 0x2b1   :  { %v392_v34 = vsub.f32 %v362_v14, %v383_v32 }
 0x2b2   :  { %v668_v35 = vpop.eup %667  ;;  %v404_v36 = vmul.f32 1.442695, %v391_v31 }
 0x2b3   :  { %v385_v37 = vpop.xlane.xlu1 %384  ;;  %412 = vadd.xlane.f32.xlu1 %v668_v35  ;;  %v406_v39 = vmul.f32 1.442695, %v392_v34 }
 0x2b4   :  { %675 = vpow2.f32 %v404_v36  ;;  %v393_v38 = vsub.f32 %v367_v15, %v385_v37 }
 0x2b5   :  { %677 = vpow2.f32 %v402_v33 }
 0x2b6   :  { %v670_v40 = vpop.eup %669  ;;  %v408_v41 = vmul.f32 1.442695, %v393_v38 }
 0x2b7   :  { %v672_v42 = vpop.eup %671  ;;  %416 = vadd.xlane.f32.xlu1 %v670_v40 }
 0x2b8   :  { %679 = vpow2.f32 %v408_v41  ;;  %410 = vadd.xlane.f32.xlu0 %v672_v42 }
 0x2b9   :  { %681 = vpow2.f32 %v406_v39 }
 0x2ba   :  { %v674_v43 = vpop.eup %673 }
 0x2bc   :  { %414 = vadd.xlane.f32.xlu0 %v674_v43 }
 0x2be   :  { %v676_v44 = vpop.eup %675 }
 0x2bf   :  { %v678_v45 = vpop.eup %677  ;;  %420 = vadd.xlane.f32.xlu1 %v676_v44 }
 0x2c0   :  { %418 = vadd.xlane.f32.xlu0 %v678_v45 }
 0x2c2   :  { %v961_v46 = vpop.eup %679 }
 0x2c3   :  { %v963_v47 = vpop.eup %681  ;;  %424 = vadd.xlane.f32.xlu1 %v961_v46 }
 0x2c4   :  { %422 = vadd.xlane.f32.xlu0 %v963_v47 }
 0x340   :  { %v413_v48 = vpop.xlane.xlu1 %412 }
 0x341   :  { %683 = vrcp.f32 %v413_v48 }
 0x344   :  { %v417_v49 = vpop.xlane.xlu1 %416 }
 0x345   :  { %685 = vrcp.f32 %v417_v49  ;;  %v411_v50 = vpop.xlane.xlu0 %410 }
 0x346   :  { %687 = vrcp.f32 %v411_v50 }
 0x349   :  { %v415_v51 = vpop.xlane.xlu0 %414 }
 0x34a   :  { %689 = vrcp.f32 %v415_v51 }
 0x34b   :  { %v684_v52 = vpop.eup %683 }
 0x34c   :  { %v435_v53 = vmul.f32 %v684_v52, %v413_v48  ;;  %v421_v54 = vpop.xlane.xlu1 %420 }
 0x34d   :  { %691 = vrcp.f32 %v421_v54  ;;  %v419_v55 = vpop.xlane.xlu0 %418 }
 0x34e   :  { %v443_v56 = vsub.f32 2.0, %v435_v53  ;;  %693 = vrcp.f32 %v419_v55 }
 0x34f   :  { %v686_v57 = vpop.eup %685 }
 0x350   :  { %v688_v58 = vpop.eup %687  ;;  %v451_v59 = vmul.f32 %v684_v52, %v443_v56  ;;  %v437_v60 = vmul.f32 %v686_v57, %v417_v49  ;;  %v425_v61 = vpop.xlane.xlu1 %424 }
 0x351   :  { %v434_v62 = vmul.f32 %v688_v58, %v411_v50  ;;  %695 = vrcp.f32 %v425_v61  ;;  %v423_v63 = vpop.xlane.xlu0 %422 }
 0x352   :  { %v459_v0 = vmul.f32 %v668_v35, %v451_v59  ;;  %v445_v1 = vsub.f32 2.0, %v437_v60  ;;  %697 = vrcp.f32 %v423_v63 }
 0x353   :  { %v442_v2 = vsub.f32 2.0, %v434_v62 }
 0x354   :  { %v690_v3 = vpop.eup %689  ;;  %467 = vst [vmem:[#allocation11 + $0x8] sm:$0xff] %v459_v0  ;;  %v453_v4 = vmul.f32 %v686_v57, %v445_v1 }
 0x355   :  { %v450_v5 = vmul.f32 %v688_v58, %v442_v2  ;;  %v436_v6 = vmul.f32 %v690_v3, %v415_v51 }
 0x356   :  { %v461_v7 = vmul.f32 %v670_v40, %v453_v4 }
 0x357   :  { %v692_v8 = vpop.eup %691  ;;  %v458_v9 = vmul.f32 %v672_v42, %v450_v5  ;;  %v444_v10 = vsub.f32 2.0, %v436_v6 }
 0x358   :  { %v694_v11 = vpop.eup %693  ;;  %469 = vst [vmem:[#allocation11 + $0x18] sm:$0xff] %v461_v7  ;;  %v439_v12 = vmul.f32 %v692_v8, %v421_v54 }
 0x359   :  { %466 = vst [vmem:[#allocation11] sm:$0xff] %v458_v9  ;;  %v452_v13 = vmul.f32 %v690_v3, %v444_v10  ;;  %v438_v14 = vmul.f32 %v694_v11, %v419_v55 }
 0x35a   :  { %v447_v15 = vsub.f32 2.0, %v439_v12 }
 0x35b   :  { %v696_v16 = vpop.eup %695  ;;  %v460_v17 = vmul.f32 %v674_v43, %v452_v13  ;;  %v446_v18 = vsub.f32 2.0, %v438_v14 }
 0x35c   :  { %v698_v19 = vpop.eup %697  ;;  %v455_v20 = vmul.f32 %v692_v8, %v447_v15  ;;  %v441_v21 = vmul.f32 %v696_v16, %v425_v61 }
 0x35d   :  { %468 = vst [vmem:[#allocation11 + $0x10] sm:$0xff] %v460_v17  ;;  %v454_v22 = vmul.f32 %v694_v11, %v446_v18  ;;  %v440_v23 = vmul.f32 %v698_v19, %v423_v63 }
 0x35e   :  { %v463_v24 = vmul.f32 %v676_v44, %v455_v20  ;;  %v449_v25 = vsub.f32 2.0, %v441_v21 }
 0x35f   :  { %v462_v26 = vmul.f32 %v678_v45, %v454_v22  ;;  %v448_v27 = vsub.f32 2.0, %v440_v23 }
 0x360   :  { %471 = vst [vmem:[#allocation11 + $0x28] sm:$0xff] %v463_v24  ;;  %v457_v28 = vmul.f32 %v696_v16, %v449_v25 }
 0x361   :  { %470 = vst [vmem:[#allocation11 + $0x20] sm:$0xff] %v462_v26  ;;  %v456_v29 = vmul.f32 %v698_v19, %v448_v27 }
 0x362   :  { %v465_v30 = vmul.f32 %v961_v46, %v457_v28 }
 0x363   :  { %v464_v31 = vmul.f32 %v963_v47, %v456_v29 }
 0x364   :  { %473 = vst [vmem:[#allocation11 + $0x38] sm:$0xff] %v465_v30 }
 0x365   :  { %472 = vst [vmem:[#allocation11 + $0x30] sm:$0xff] %v464_v31 }
 0x366   :  { %820 = shalt.err (!%p817_p2)
}
 0x367   :  { %s821_s9 = scalar_lea.hbm %s989_s5, 1024 }
 0x368   :  { %p822_p3 = scmp.ne.s32.totalorder %s989_s5, %s821_s9  ;;  %p825_p4 = scmp.lt.u32.totalorder %s821_s9, %s989_s5 }
 0x36a   :  { %p827_p5 = pnand %p825_p4, %p822_p3 }
 0x36c   :  { %830 = shalt.err (!%p827_p5)
}
 0x36d   :  { %485 = dma.vmem_to_hbm [thread:$0]  %s480_s3, 1024, %s989_s5, [#allocation4], %s841_s30, %s841_s30, %s842_s6  }
 0x36e   :  { %837 = dma.done.wait [#allocation4], 1024  }
 0x36f   :  { %838 = vsyncadd [#allocation4], 4294966272 }
 0x370   :  { %489 = vsyncpa [#allocation3], 1 }
 0x371   :  { %490 = vsyncpa [#allocation6], 1 }
 0x372   :  { %491 = vsyncpa [#allocation9], 1 }
 0x373   :  { %492 = vsyncpa [#allocation4], 1 }

// kernel: tpu_custom_call.1
= control target key start
LH: loop header
LB: loop body
LE: loop exit
PB: predicated region body
PF: predicated region fallthrough
CT: control target
= control target key end

     0   :  { %10 = vsyncpa [#allocation3], 0  ;;  %s984_s0 = inlined_call_operand.hbm [shape: f32[64,32], index: 0, kind: input, shape index: {}]   ;;  %s985_s1 = inlined_call_operand.hbm [shape: f32[32,128], index: 1, kind: input, shape index: {}]   ;;  %s986_s2 = inlined_call_operand.hbm [shape: f32[1,128], index: 2, kind: input, shape index: {}]   ;;  %s987_s3 = inlined_call_operand.hbm [shape: f32[128,128], index: 3, kind: input, shape index: {}]   ;;  %s988_s4 = inlined_call_operand.hbm [shape: f32[1,128], index: 4, kind: input, shape index: {}]   ;;  %s989_s5 = inlined_call_operand.hbm [shape: f32[64,128], index: 5, kind: output, shape index: {}]  }
   0x1   :  { %11 = vsyncpa [#allocation6], 0 }
   0x2   :  { %12 = vsyncpa [#allocation9], 0 }
   0x3   :  { %13 = vsyncpa [#allocation4], 0  ;;  %s839_s18 = smov [#allocation5]   ;;  %s840_s20 = smov [#allocation8]  }
   0x4   :  { %s31_s19 = sshll.u32 %s839_s18, 4  ;;  %s53_s21 = sshll.u32 %s840_s20, 4  ;;  %s32_s19 = int_to_ptr.vmem [resolvable:$true] %s31_s19  ;;  %s877_s21 = int_to_ptr.vmem [resolvable:$true] %s53_s21 }
   0x5   :  { %s699_s24 = scalar_lea.hbm %s985_s1, 512 }
   0x6   :  { %p700_p0 = scmp.ne.s32.totalorder %s985_s1, %s699_s24  ;;  %p703_p1 = scmp.lt.u32.totalorder %s699_s24, %s985_s1 }
   0x8   :  { %p705_p2 = pnand %p703_p1, %p700_p0 }
   0xa   :  { %708 = shalt.err (!%p705_p2)
}
   0xb   :  { %s709_s29 = scalar_lea.vmem %s32_s19, 512  ;;  %p714_p4 = scmp.lt.s32.totalorder %s32_s19, %s32_s19 }
   0xc   :  { %p710_p3 = scmp.ne.s32.totalorder %s32_s19, %s709_s29  ;;  %p715_p5 = scmp.lt.s32.totalorder %s709_s29, %s709_s29 }
   0xe   :  { %p716_p6 = por %p715_p5, %p714_p4 }
  0x10   :  { %p717_p7 = pnand %p716_p6, %p710_p3 }
  0x12   :  { %720 = shalt.err (!%p717_p7)
}
  0x13   :  { %s841_s30 = smov 128   ;;  %s842_s6 = smov 8  }
  0x14   :  { %37 = dma.hbm_to_vmem [thread:$0]  %s985_s1, 512, %s32_s19, [#allocation6], %s841_s30, %s841_s30, %s842_s6  }
  0x15   :  { %s721_s11 = scalar_lea.hbm %s987_s3, 2048 }
  0x16   :  { %p722_p8 = scmp.ne.s32.totalorder %s987_s3, %s721_s11  ;;  %p725_p9 = scmp.lt.u32.totalorder %s721_s11, %s987_s3 }
  0x18   :  { %p727_p10 = pnand %p725_p9, %p722_p8 }
  0x1a   :  { %730 = shalt.err (!%p727_p10)
}
  0x1b   :  { %s731_s16 = scalar_lea.vmem %s877_s21, 2048  ;;  %p736_p12 = scmp.lt.s32.totalorder %s877_s21, %s877_s21 }
  0x1c   :  { %p732_p11 = scmp.ne.s32.totalorder %s877_s21, %s731_s16  ;;  %p737_p13 = scmp.lt.s32.totalorder %s731_s16, %s731_s16 }
  0x1e   :  { %p738_p0 = por %p737_p13, %p736_p12 }
  0x20   :  { %p739_p1 = pnand %p738_p0, %p732_p11 }
  0x22   :  { %742 = shalt.err (!%p739_p1)
}
  0x23   :  { %59 = dma.hbm_to_vmem [thread:$0]  %s987_s3, 2048, %s877_s21, [#allocation9], %s841_s30, %s841_s30, %s842_s6  }
  0x24   :  { %s843_s18 = smov [#allocation2]   ;;  %s844_s20 = smov [#allocation7]  }
  0x25   :  { %s19_s19 = sshll.u32 %s843_s18, 4  ;;  %s44_s22 = sshll.u32 %s844_s20, 4  ;;  %s20_s19 = int_to_ptr.vmem [resolvable:$true] %s19_s19  ;;  %s45_s22 = int_to_ptr.vmem [resolvable:$true] %s44_s22 }
  0x26   :  { %s743_s25 = scalar_lea.hbm %s984_s0, 1024 }
  0x27   :  { %p744_p2 = scmp.ne.s32.totalorder %s984_s0, %s743_s25  ;;  %p747_p3 = scmp.lt.u32.totalorder %s743_s25, %s984_s0 }
  0x29   :  { %p749_p4 = pnand %p747_p3, %p744_p2 }
  0x2b   :  { %752 = shalt.err (!%p749_p4)
}
  0x2c   :  { %s753_s3 = scalar_lea.vmem %s20_s19, 1024  ;;  %p758_p6 = scmp.lt.s32.totalorder %s20_s19, %s20_s19 }
  0x2d   :  { %p754_p5 = scmp.ne.s32.totalorder %s20_s19, %s753_s3  ;;  %p759_p7 = scmp.lt.s32.totalorder %s753_s3, %s753_s3 }
  0x2f   :  { %p760_p8 = por %p759_p7, %p758_p6 }
  0x31   :  { %p761_p9 = pnand %p760_p8, %p754_p5 }
  0x33   :  { %764 = shalt.err (!%p761_p9)
}
  0x34   :  { %25 = dma.hbm_to_vmem [thread:$0]  %s984_s0, 1024, %s20_s19, [#allocation3], %s841_s30, %s841_s30, %s842_s6  }
  0x35   :  { %s765_s10 = scalar_lea.hbm %s986_s2, 16 }
  0x36   :  { %p766_p10 = scmp.ne.s32.totalorder %s986_s2, %s765_s10  ;;  %p769_p11 = scmp.lt.u32.totalorder %s765_s10, %s986_s2 }
  0x38   :  { %p771_p12 = pnand %p769_p11, %p766_p10 }
  0x3a   :  { %774 = shalt.err (!%p771_p12)
}
  0x3b   :  { %s775_s15 = scalar_lea.vmem %s45_s22, 16  ;;  %s779_s16 = scalar_lea.vmem %s45_s22, 32 }
  0x3c   :  { %p776_p13 = scmp.ne.s32.totalorder %s45_s22, %s775_s15  ;;  %p780_p0 = scmp.lt.s32.totalorder %s45_s22, %s45_s22 }
  0x3d   :  { %p781_p1 = scmp.lt.s32.totalorder %s779_s16, %s775_s15 }
  0x3f   :  { %p782_p2 = por %p781_p1, %p780_p0 }
  0x41   :  { %p783_p3 = pnand %p782_p2, %p776_p13 }
  0x43   :  { %786 = shalt.err (!%p783_p3)
}
  0x44   :  { %47 = dma.hbm_to_vmem [thread:$0]  %s986_s2, 16, %s45_s22, [#allocation6]  }
  0x45   :  { %s845_s17 = smov [#allocation10]   ;;  %s787_s23 = scalar_lea.hbm %s988_s4, 16 }
  0x46   :  { %s66_s18 = sshll.u32 %s845_s17, 4  ;;  %p788_p4 = scmp.ne.s32.totalorder %s988_s4, %s787_s23  ;;  %s67_s18 = int_to_ptr.vmem [resolvable:$true] %s66_s18 }
  0x47   :  { %p791_p5 = scmp.lt.u32.totalorder %s787_s23, %s988_s4 }
  0x49   :  { %p793_p6 = pnand %p791_p5, %p788_p4 }
  0x4b   :  { %796 = shalt.err (!%p793_p6)
}
  0x4c   :  { %s797_s28 = scalar_lea.vmem %s67_s18, 16  ;;  %s801_s2 = scalar_lea.vmem %s67_s18, 32 }
  0x4d   :  { %p798_p7 = scmp.ne.s32.totalorder %s67_s18, %s797_s28  ;;  %p802_p8 = scmp.lt.s32.totalorder %s67_s18, %s67_s18 }
  0x4e   :  { %p803_p9 = scmp.lt.s32.totalorder %s801_s2, %s797_s28 }
  0x50   :  { %p804_p10 = por %p803_p9, %p802_p8 }
  0x52   :  { %p805_p11 = pnand %p804_p10, %p798_p7 }
  0x54   :  { %808 = shalt.err (!%p805_p11)
}
  0x55   :  { %69 = dma.hbm_to_vmem [thread:$0]  %s988_s4, 16, %s67_s18, [#allocation9]  }
  0x56   :  { %831 = dma.done.wait [#allocation3], 1024  }
  0x57   :  { %832 = vsyncadd [#allocation3], 4294966272 }
  0x58   :  { %833 = dma.done.wait [#allocation6], 528  }
  0x59   :  { %834 = vsyncadd [#allocation6], 4294966768 }
  0x5a   :  { %835 = dma.done.wait [#allocation9], 2064  }
  0x5b   :  { %836 = vsyncadd [#allocation9], 4294965232  ;;  %vm104_vm0 = vcmask 261120   ;;  %v93_v0 = vld [vmem:[#allocation5] sm:$0xff]  ;;  %v94_v1 = vld [vmem:[#allocation5 + $0x8] sm:$0xff]  ;;  %s846_s4 = smov [#allocation11]  }
  0x5c   :  { %v95_v2 = vld [vmem:[#allocation5 + $0x10] sm:$0xff]  ;;  %v603_v3 = vpack.c.bf16 %v94_v1, %v93_v0  ;;  %v96_v4 = vld [vmem:[#allocation5 + $0x18] sm:$0xff]  ;;  %v85_v5 = vld [vmem:[#allocation2] sm:$0xff]  ;;  %s479_s3 = sshll.u32 %s846_s4, 4  ;;  %s480_s3 = int_to_ptr.vmem [resolvable:$true] %s479_s3 }
  0x5d   :  { %v607_v6 = vpack.c.bf16 %v96_v4, %v95_v2  ;;  %547 = vmatprep.mubr.msk.f32.mxu0 %vm104_vm0, %v85_v5  ;;  %v242_v7 = vld [vmem:[#allocation8] sm:$0xff]  ;;  %v243_v8 = vld [vmem:[#allocation8 + $0x8] sm:$0xff]  ;;  %v244_v9 = vld [vmem:[#allocation8 + $0x10] sm:$0xff]  ;;  %s809_s21 = scalar_lea.vmem %s480_s3, 1024  ;;  %p814_p13 = scmp.lt.s32.totalorder %s480_s3, %s480_s3 }
  0x5e   :  { %604 = vmatprep.subr.bf16.mxu0 %v603_v3  ;;  %v611_v10 = vpack.c.bf16 %v243_v8, %v242_v7  ;;  %v245_v11 = vld [vmem:[#allocation8 + $0x18] sm:$0xff]  ;;  %v86_v13 = vld [vmem:[#allocation2 + $0x8] sm:$0xff]  ;;  %v87_v14 = vld [vmem:[#allocation2 + $0x10] sm:$0xff]  ;;  %p810_p12 = scmp.ne.s32.totalorder %s480_s3, %s809_s21  ;;  %p815_p0 = scmp.lt.s32.totalorder %s809_s21, %s809_s21 }
  0x5f   :  { %606 = vmatpush3.bf16.msra.mxu0 %v603_v3  ;;  %v615_v12 = vpack.c.bf16 %v245_v11, %v244_v9  ;;  %v246_v15 = vld [vmem:[#allocation8 + $0x20] sm:$0xff]  ;;  %v247_v16 = vld [vmem:[#allocation8 + $0x28] sm:$0xff]  ;;  %v88_v17 = vld [vmem:[#allocation2 + $0x18] sm:$0xff] }
  0x60   :  { %608 = vmatprep.subr.bf16.mxu0 %v607_v6  ;;  %643 = vmatprep.subr.bf16.mxu1 %v611_v10  ;;  %v619_v18 = vpack.c.bf16 %v247_v16, %v246_v15  ;;  %v89_v19 = vld [vmem:[#allocation2 + $0x20] sm:$0xff]  ;;  %v248_v20 = vld [vmem:[#allocation8 + $0x30] sm:$0xff]  ;;  %v90_v22 = vld [vmem:[#allocation2 + $0x28] sm:$0xff]  ;;  %p816_p1 = por %p815_p0, %p814_p13 }
  0x61   :  { %651 = vmatpush3.bf16.msra.mxu1 %v611_v10  ;;  %v249_v21 = vld [vmem:[#allocation8 + $0x38] sm:$0xff]  ;;  %v91_v24 = vld [vmem:[#allocation2 + $0x30] sm:$0xff]  ;;  %v250_v25 = vld [vmem:[#allocation8 + $0x40] sm:$0xff] }
  0x62   :  { %644 = vmatprep.subr.bf16.mxu1 %v615_v12  ;;  %v623_v23 = vpack.c.bf16 %v249_v21, %v248_v20  ;;  %v251_v26 = vld [vmem:[#allocation8 + $0x48] sm:$0xff]  ;;  %v92_v27 = vld [vmem:[#allocation2 + $0x38] sm:$0xff]  ;;  %v254_v32 = vld [vmem:[#allocation8 + $0x60] sm:$0xff]  ;;  %p817_p2 = pnand %p816_p1, %p810_p12 }
  0x63   :  { %610 = vmatpush3.bf16.msra.mxu0 %v607_v6  ;;  %v627_v28 = vpack.c.bf16 %v251_v26, %v250_v25  ;;  %v252_v29 = vld [vmem:[#allocation8 + $0x50] sm:$0xff]  ;;  %v253_v30 = vld [vmem:[#allocation8 + $0x58] sm:$0xff]  ;;  %v255_v33 = vld [vmem:[#allocation8 + $0x68] sm:$0xff] }
  0x64   :  { %612 = vmatprep.subr.bf16.mxu0 %v611_v10  ;;  %v631_v31 = vpack.c.bf16 %v253_v30, %v252_v29  ;;  %v635_v34 = vpack.c.bf16 %v255_v33, %v254_v32  ;;  %v256_v35 = vld [vmem:[#allocation8 + $0x70] sm:$0xff]  ;;  %v257_v36 = vld [vmem:[#allocation8 + $0x78] sm:$0xff]  ;;  %v502_v63 = vld [vmem:[#allocation10] ss:$0 sm:$0xff] }
  0x65   :  { %652 = vmatpush3.bf16.msra.mxu1 %v615_v12  ;;  %v639_v37 = vpack.c.bf16 %v257_v36, %v256_v35  ;;  %v493_v38 = vld [vmem:[#allocation7] ss:$0 sm:$0xff] }
  0x66   :  { %548 = vmatmul.mubr.msk.f32.vlgmr.msra.gmra.mrb[0].mxu0 %vm104_vm0, %v86_v13  ;;  %645 = vmatprep.subr.bf16.mxu1 %v619_v18 }
  0x67   :  { %550 = vmatprep.mubr.msk.f32.mxu0 %vm104_vm0, %v87_v14  ;;  %614 = vmatpush3.bf16.msra.mxu0 %v611_v10 }
  0x68   :  { %616 = vmatprep.subr.bf16.mxu0 %v615_v12 }
  0x69   :  { %653 = vmatpush3.bf16.msra.mxu1 %v619_v18 }
  0x6a   :  { %551 = vmatmul.mubr.msk.f32.gmra.mrb[2].mxu0 %vm104_vm0, %v88_v17  ;;  %646 = vmatprep.subr.bf16.mxu1 %v623_v23 }
  0x6b   :  { %553 = vmatprep.mubr.msk.f32.mxu0 %vm104_vm0, %v89_v19  ;;  %618 = vmatpush3.bf16.msra.mxu0 %v615_v12 }
  0x6c   :  { %620 = vmatprep.subr.bf16.mxu0 %v619_v18 }
  0x6d   :  { %654 = vmatpush3.bf16.msra.mxu1 %v623_v23 }
  0x6e   :  { %554 = vmatmul.mubr.msk.f32.gmra.mrb[4].mxu0 %vm104_vm0, %v90_v22  ;;  %647 = vmatprep.subr.bf16.mxu1 %v627_v28 }
  0x6f   :  { %556 = vmatprep.mubr.msk.f32.mxu0 %vm104_vm0, %v91_v24  ;;  %622 = vmatpush3.bf16.msra.mxu0 %v619_v18 }
  0x70   :  { %624 = vmatprep.subr.bf16.mxu0 %v623_v23 }
  0x71   :  { %655 = vmatpush3.bf16.msra.mxu1 %v627_v28 }
  0x72   :  { %557 = vmatmul.mubr.msk.f32.gmra.mrb[6].mxu0 %vm104_vm0, %v92_v27  ;;  %648 = vmatprep.subr.bf16.mxu1 %v631_v31 }
  0x73   :  { %626 = vmatpush3.bf16.msra.mxu0 %v623_v23 }
  0x74   :  { %628 = vmatprep.subr.bf16.mxu0 %v627_v28 }
  0x75   :  { %656 = vmatpush3.bf16.msra.mxu1 %v631_v31 }
  0x76   :  { %649 = vmatprep.subr.bf16.mxu1 %v635_v34 }
  0x77   :  { %630 = vmatpush3.bf16.msra.mxu0 %v627_v28 }
  0x78   :  { %632 = vmatprep.subr.bf16.mxu0 %v631_v31 }
  0x79   :  { %657 = vmatpush3.bf16.msra.mxu1 %v635_v34 }
  0x7a   :  { %650 = vmatprep.subr.bf16.mxu1 %v639_v37 }
  0x7b   :  { %634 = vmatpush3.bf16.msra.mxu0 %v631_v31 }
  0x7c   :  { %636 = vmatprep.subr.bf16.mxu0 %v635_v34 }
  0x7d   :  { %658 = vmatpush3.bf16.msra.mxu1 %v639_v37 }
  0x7f   :  { %638 = vmatpush3.bf16.msra.mxu0 %v635_v34 }
  0x80   :  { %640 = vmatprep.subr.bf16.mxu0 %v639_v37 }
  0x83   :  { %642 = vmatpush3.bf16.msra.mxu0 %v639_v37 }
 0x139   :  { %v549_v39 = vpop.f32.mrb[0].mxu0 }
 0x13a   :  { %v201_v40 = vadd.f32 %v549_v39, %v493_v38  ;;  %v195_v41 = vpop.f32.mrb[1].mxu0 }
 0x13b   :  { %v196_v42 = vadd.f32 %v493_v38, %v195_v41 }
 0x13c   :  { %v235_v45 = vmax.f32 %v201_v40, 0.0 }
 0x13d   :  { %v234_v43 = vmax.f32 %v196_v42, 0.0  ;;  %v552_v44 = vpop.f32.mrb[2].mxu0 }
 0x13e   :  { %v211_v46 = vadd.f32 %v552_v44, %v493_v38  ;;  %v205_v47 = vpop.f32.mrb[3].mxu0 }
 0x13f   :  { %591 = vmatprep.mubr.f32.mxu0 %v234_v43  ;;  %v206_v48 = vadd.f32 %v493_v38, %v205_v47 }
 0x140   :  { %592 = vmatmul.mubr.f32.vlgmr.msra.gmra.mrb[8].mxu0 %v235_v45  ;;  %v237_v51 = vmax.f32 %v211_v46, 0.0 }
 0x141   :  { %v555_v49 = vpop.f32.mrb[4].mxu0  ;;  %v236_v50 = vmax.f32 %v206_v48, 0.0 }
 0x142   :  { %v221_v52 = vadd.f32 %v555_v49, %v493_v38  ;;  %v215_v53 = vpop.f32.mrb[5].mxu0 }
 0x143   :  { %v216_v54 = vadd.f32 %v493_v38, %v215_v53  ;;  %594 = vmatprep.mubr.f32.mxu1 %v236_v50 }
 0x144   :  { %v239_v55 = vmax.f32 %v221_v52, 0.0  ;;  %595 = vmatmul.mubr.f32.vlgmr.msra.gmra.mrb[0].mxu1 %v237_v51 }
 0x145   :  { %v238_v56 = vmax.f32 %v216_v54, 0.0  ;;  %v558_v57 = vpop.f32.mrb[6].mxu0 }
 0x146   :  { %v231_v58 = vadd.f32 %v558_v57, %v493_v38  ;;  %v225_v59 = vpop.f32.mrb[7].mxu0 }
 0x147   :  { %v226_v60 = vadd.f32 %v493_v38, %v225_v59  ;;  %597 = vmatprep.mubr.f32.mxu1 %v238_v56 }
 0x148   :  { %v241_v61 = vmax.f32 %v231_v58, 0.0  ;;  %598 = vmatmul.mubr.f32.gmra.mrb[2].mxu1 %v239_v55 }
 0x149   :  { %v240_v62 = vmax.f32 %v226_v60, 0.0 }
 0x14b   :  { %600 = vmatprep.mubr.f32.mxu1 %v240_v62 }
 0x14c   :  { %601 = vmatmul.mubr.f32.gmra.mrb[4].mxu1 %v241_v61 }
 0x213   :  { %v593_v0 = vpop.f32.mrb[8].mxu0 }
 0x214   :  { %v337_v1 = vadd.f32 %v593_v0, %v502_v63  ;;  %v331_v2 = vpop.f32.mrb[9].mxu0 }
 0x215   :  { %v332_v4 = vadd.f32 %v502_v63, %v331_v2 }
 0x216   :  { %372 = vmax.xlane.f32.xlu0 %v337_v1 }
 0x217   :  { %v596_v3 = vpop.f32.mrb[0].mxu1 }
 0x218   :  { %v347_v5 = vadd.f32 %v596_v3, %v502_v63  ;;  %v341_v6 = vpop.f32.mrb[1].mxu1 }
 0x219   :  { %v342_v8 = vadd.f32 %v502_v63, %v341_v6 }
 0x21a   :  { %376 = vmax.xlane.f32.xlu1 %v347_v5  ;;  %370 = vmax.xlane.f32.xlu0 %v332_v4 }
 0x21b   :  { %v599_v7 = vpop.f32.mrb[2].mxu1 }
 0x21c   :  { %v351_v9 = vpop.f32.mrb[3].mxu1  ;;  %v357_v12 = vadd.f32 %v599_v7, %v502_v63 }
 0x21d   :  { %v352_v10 = vadd.f32 %v502_v63, %v351_v9 }
 0x21e   :  { %374 = vmax.xlane.f32.xlu1 %v342_v8 }
 0x21f   :  { %v602_v11 = vpop.f32.mrb[4].mxu1  ;;  %378 = vmax.xlane.f32.xlu0 %v352_v10 }
 0x220   :  { %v361_v13 = vpop.f32.mrb[5].mxu1  ;;  %v367_v15 = vadd.f32 %v602_v11, %v502_v63 }
 0x221   :  { %v362_v14 = vadd.f32 %v502_v63, %v361_v13 }
 0x222   :  { %380 = vmax.xlane.f32.xlu1 %v357_v12 }
 0x223   :  { %382 = vmax.xlane.f32.xlu0 %v362_v14 }
 0x226   :  { %384 = vmax.xlane.f32.xlu1 %v367_v15 }
 0x2a3   :  { %v373_v16 = vpop.xlane.xlu0 %372 }
 0x2a4   :  { %v387_v17 = vsub.f32 %v337_v1, %v373_v16 }
 0x2a6   :  { %v396_v18 = vmul.f32 1.442695, %v387_v17 }
 0x2a7   :  { %v377_v19 = vpop.xlane.xlu1 %376  ;;  %v371_v20 = vpop.xlane.xlu0 %370 }
 0x2a8   :  { %667 = vpow2.f32 %v396_v18  ;;  %v389_v21 = vsub.f32 %v347_v5, %v377_v19  ;;  %v386_v22 = vsub.f32 %v332_v4, %v371_v20 }
 0x2aa   :  { %v400_v23 = vmul.f32 1.442695, %v389_v21  ;;  %v394_v24 = vmul.f32 1.442695, %v386_v22 }
 0x2ab   :  { %v375_v25 = vpop.xlane.xlu1 %374 }
 0x2ac   :  { %669 = vpow2.f32 %v400_v23  ;;  %v388_v26 = vsub.f32 %v342_v8, %v375_v25  ;;  %v379_v27 = vpop.xlane.xlu0 %378 }
 0x2ad   :  { %671 = vpow2.f32 %v394_v24  ;;  %v390_v28 = vsub.f32 %v352_v10, %v379_v27 }
 0x2ae   :  { %v398_v29 = vmul.f32 1.442695, %v388_v26 }
 0x2af   :  { %v381_v30 = vpop.xlane.xlu1 %380  ;;  %v402_v33 = vmul.f32 1.442695, %v390_v28 }
 0x2b0   :  { %673 = vpow2.f32 %v398_v29  ;;  %v391_v31 = vsub.f32 %v357_v12, %v381_v30  ;;  %v383_v32 = vpop.xlane.xlu0 %382 }
 0x2b1   :  { %v392_v34 = vsub.f32 %v362_v14, %v383_v32 }
 0x2b2   :  { %v668_v35 = vpop.eup %667  ;;  %v404_v36 = vmul.f32 1.442695, %v391_v31 }
 0x2b3   :  { %v385_v37 = vpop.xlane.xlu1 %384  ;;  %412 = vadd.xlane.f32.xlu1 %v668_v35  ;;  %v406_v39 = vmul.f32 1.442695, %v392_v34 }
 0x2b4   :  { %675 = vpow2.f32 %v404_v36  ;;  %v393_v38 = vsub.f32 %v367_v15, %v385_v37 }
 0x2b5   :  { %677 = vpow2.f32 %v402_v33 }
 0x2b6   :  { %v670_v40 = vpop.eup %669  ;;  %v408_v41 = vmul.f32 1.442695, %v393_v38 }
 0x2b7   :  { %v672_v42 = vpop.eup %671  ;;  %416 = vadd.xlane.f32.xlu1 %v670_v40 }
 0x2b8   :  { %679 = vpow2.f32 %v408_v41  ;;  %410 = vadd.xlane.f32.xlu0 %v672_v42 }
 0x2b9   :  { %681 = vpow2.f32 %v406_v39 }
 0x2ba   :  { %v674_v43 = vpop.eup %673 }
 0x2bc   :  { %414 = vadd.xlane.f32.xlu0 %v674_v43 }
 0x2be   :  { %v676_v44 = vpop.eup %675 }
 0x2bf   :  { %v678_v45 = vpop.eup %677  ;;  %420 = vadd.xlane.f32.xlu1 %v676_v44 }
 0x2c0   :  { %418 = vadd.xlane.f32.xlu0 %v678_v45 }
 0x2c2   :  { %v961_v46 = vpop.eup %679 }
 0x2c3   :  { %v963_v47 = vpop.eup %681  ;;  %424 = vadd.xlane.f32.xlu1 %v961_v46 }
 0x2c4   :  { %422 = vadd.xlane.f32.xlu0 %v963_v47 }
 0x340   :  { %v413_v48 = vpop.xlane.xlu1 %412 }
 0x341   :  { %683 = vrcp.f32 %v413_v48 }
 0x344   :  { %v417_v49 = vpop.xlane.xlu1 %416 }
 0x345   :  { %685 = vrcp.f32 %v417_v49  ;;  %v411_v50 = vpop.xlane.xlu0 %410 }
 0x346   :  { %687 = vrcp.f32 %v411_v50 }
 0x349   :  { %v415_v51 = vpop.xlane.xlu0 %414 }
 0x34a   :  { %689 = vrcp.f32 %v415_v51 }
 0x34b   :  { %v684_v52 = vpop.eup %683 }
 0x34c   :  { %v435_v53 = vmul.f32 %v684_v52, %v413_v48  ;;  %v421_v54 = vpop.xlane.xlu1 %420 }
 0x34d   :  { %691 = vrcp.f32 %v421_v54  ;;  %v419_v55 = vpop.xlane.xlu0 %418 }
 0x34e   :  { %v443_v56 = vsub.f32 2.0, %v435_v53  ;;  %693 = vrcp.f32 %v419_v55 }
 0x34f   :  { %v686_v57 = vpop.eup %685 }
 0x350   :  { %v688_v58 = vpop.eup %687  ;;  %v451_v59 = vmul.f32 %v684_v52, %v443_v56  ;;  %v437_v60 = vmul.f32 %v686_v57, %v417_v49  ;;  %v425_v61 = vpop.xlane.xlu1 %424 }
 0x351   :  { %v434_v62 = vmul.f32 %v688_v58, %v411_v50  ;;  %695 = vrcp.f32 %v425_v61  ;;  %v423_v63 = vpop.xlane.xlu0 %422 }
 0x352   :  { %v459_v0 = vmul.f32 %v668_v35, %v451_v59  ;;  %v445_v1 = vsub.f32 2.0, %v437_v60  ;;  %697 = vrcp.f32 %v423_v63 }
 0x353   :  { %v442_v2 = vsub.f32 2.0, %v434_v62 }
 0x354   :  { %v690_v3 = vpop.eup %689  ;;  %467 = vst [vmem:[#allocation11 + $0x8] sm:$0xff] %v459_v0  ;;  %v453_v4 = vmul.f32 %v686_v57, %v445_v1 }
 0x355   :  { %v450_v5 = vmul.f32 %v688_v58, %v442_v2  ;;  %v436_v6 = vmul.f32 %v690_v3, %v415_v51 }
 0x356   :  { %v461_v7 = vmul.f32 %v670_v40, %v453_v4 }
 0x357   :  { %v692_v8 = vpop.eup %691  ;;  %v458_v9 = vmul.f32 %v672_v42, %v450_v5  ;;  %v444_v10 = vsub.f32 2.0, %v436_v6 }
 0x358   :  { %v694_v11 = vpop.eup %693  ;;  %469 = vst [vmem:[#allocation11 + $0x18] sm:$0xff] %v461_v7  ;;  %v439_v12 = vmul.f32 %v692_v8, %v421_v54 }
 0x359   :  { %466 = vst [vmem:[#allocation11] sm:$0xff] %v458_v9  ;;  %v452_v13 = vmul.f32 %v690_v3, %v444_v10  ;;  %v438_v14 = vmul.f32 %v694_v11, %v419_v55 }
 0x35a   :  { %v447_v15 = vsub.f32 2.0, %v439_v12 }
 0x35b   :  { %v696_v16 = vpop.eup %695  ;;  %v460_v17 = vmul.f32 %v674_v43, %v452_v13  ;;  %v446_v18 = vsub.f32 2.0, %v438_v14 }
 0x35c   :  { %v698_v19 = vpop.eup %697  ;;  %v455_v20 = vmul.f32 %v692_v8, %v447_v15  ;;  %v441_v21 = vmul.f32 %v696_v16, %v425_v61 }
 0x35d   :  { %468 = vst [vmem:[#allocation11 + $0x10] sm:$0xff] %v460_v17  ;;  %v454_v22 = vmul.f32 %v694_v11, %v446_v18  ;;  %v440_v23 = vmul.f32 %v698_v19, %v423_v63 }
 0x35e   :  { %v463_v24 = vmul.f32 %v676_v44, %v455_v20  ;;  %v449_v25 = vsub.f32 2.0, %v441_v21 }
 0x35f   :  { %v462_v26 = vmul.f32 %v678_v45, %v454_v22  ;;  %v448_v27 = vsub.f32 2.0, %v440_v23 }
 0x360   :  { %471 = vst [vmem:[#allocation11 + $0x28] sm:$0xff] %v463_v24  ;;  %v457_v28 = vmul.f32 %v696_v16, %v449_v25 }
 0x361   :  { %470 = vst [vmem:[#allocation11 + $0x20] sm:$0xff] %v462_v26  ;;  %v456_v29 = vmul.f32 %v698_v19, %v448_v27 }
 0x362   :  { %v465_v30 = vmul.f32 %v961_v46, %v457_v28 }
 0x363   :  { %v464_v31 = vmul.f32 %v963_v47, %v456_v29 }
 0x364   :  { %473 = vst [vmem:[#allocation11 + $0x38] sm:$0xff] %v465_v30 }
 0x365   :  { %472 = vst [vmem:[#allocation11 + $0x30] sm:$0xff] %v464_v31 }
 0x366   :  { %820 = shalt.err (!%p817_p2)
}
 0x367   :  { %s821_s9 = scalar_lea.hbm %s989_s5, 1024 }
 0x368   :  { %p822_p3 = scmp.ne.s32.totalorder %s989_s5, %s821_s9  ;;  %p825_p4 = scmp.lt.u32.totalorder %s821_s9, %s989_s5 }
 0x36a   :  { %p827_p5 = pnand %p825_p4, %p822_p3 }
 0x36c   :  { %830 = shalt.err (!%p827_p5)
}
 0x36d   :  { %485 = dma.vmem_to_hbm [thread:$0]  %s480_s3, 1024, %s989_s5, [#allocation4], %s841_s30, %s841_s30, %s842_s6  }
 0x36e   :  { %837 = dma.done.wait [#allocation4], 1024  }
 0x36f   :  { %838 = vsyncadd [#allocation4], 4294966272 }
 0x370   :  { %489 = vsyncpa [#allocation3], 1 }
 0x371   :  { %490 = vsyncpa [#allocation6], 1 }
 0x372   :  { %491 = vsyncpa [#allocation9], 1 }
 0x373   :  { %492 = vsyncpa [#allocation4], 1 }

</bundles_post_ra>
